<compile_context>
chip_gen: v7x
topology: tpu7x:2x2x1
jax: 0.10.0
libtpu: 0.0.40
codegen_flags: <defaults>
</compile_context>

<pallas_src>
import functools

import jax
import jax.numpy as jnp
from jax.experimental import pallas as pl
from jax.experimental.pallas import tpu as pltpu


def _round_up(x: int, m: int) -> int:
    return ((x + m - 1) // m) * m


def _pick_tile(padded: int, cap: int, align: int) -> int:
    """Largest multiple of `align` <= min(cap, padded) that divides `padded`."""
    t = max(min(cap, padded) // align * align, align)
    while padded % t != 0:
        t -= align
    return t


def _vmem_limit_bytes() -> int:
    """Generation-aware VMEM budget: ~48 MiB on v7x, ~96 MiB on v5e/v6e."""
    try:
        cap = pltpu.get_tpu_info().vmem_capacity_bytes
    except Exception:
        cap = 64 * 1024 * 1024  # conservative fallback (v7x-sized)
    return int(min(cap * 3 // 4, 100 * 1024 * 1024))


# --------------------------------------------------------------------------
# Kernels
# --------------------------------------------------------------------------

def _linear_kernel_single_k(x_ref, wt_ref, b_ref, o_ref):
    # Whole reduction in one tile: no accumulator scratch, no zero init,
    # no read-modify-write -- just dot + bias + cast.
    o_ref[...] = (
        jnp.dot(x_ref[...], wt_ref[...], preferred_element_type=jnp.float32)
        + b_ref[...]
    ).astype(o_ref.dtype)


def _linear_kernel_multi_k(x_ref, wt_ref, b_ref, o_ref, acc_ref):
    # x_ref:  (tm, tk), wt_ref: (tk, tn) pre-transposed, b_ref: (1, tn) f32,
    # acc_ref: (tm, tn) f32 VMEM accumulator persisting across the K axis.
    k = pl.program_id(2)
    last = pl.num_programs(2) - 1
    partial = jnp.dot(x_ref[...], wt_ref[...], preferred_element_type=jnp.float32)

    @pl.when(k == 0)
    def _init():
        acc_ref[...] = jnp.zeros_like(acc_ref)

    @pl.when(k != last)
    def _accum():
        acc_ref[...] += partial

    @pl.when(k == last)
    def _finalize():
        # Fuse the final partial product + bias into the epilogue: saves one
        # (tm, tn) f32 accumulator store + reload per output block.
        o_ref[...] = (acc_ref[...] + partial + b_ref[...]).astype(o_ref.dtype)


# --------------------------------------------------------------------------
# Jitted forward (weight/bias already transposed + padded outside this path)
# --------------------------------------------------------------------------

@functools.partial(
    jax.jit, static_argnames=("out_dim", "tm", "tn", "tk", "vmem_limit")
)
def _linear_forward(x, wt_p, b_p, *, out_dim, tm, tn, tk, vmem_limit):
    B, K = x.shape
    Kp, Np = wt_p.shape
    out_dtype = x.dtype
    Mp = _round_up(B, tm)

    if x.dtype != wt_p.dtype:  # optional bf16 compute path
        x = x.astype(wt_p.dtype)
    # Pad x only when actually required (jnp.pad = full extra HBM pass on x).
    if Mp != B or Kp != K:
        x = jnp.pad(x, ((0, Mp - B), (0, Kp - K)))

    grid_m, grid_n, grid_k = Mp // tm, Np // tn, Kp // tk

    if grid_k == 1:
        # Single-K fast path.
        out_p = pl.pallas_call(
            _linear_kernel_single_k,
            out_shape=jax.ShapeDtypeStruct((Mp, Np), out_dtype),
            grid_spec=pltpu.PrefetchScalarGridSpec(
                num_scalar_prefetch=0,
                grid=(grid_m, grid_n),
                in_specs=[
                    pl.BlockSpec((tm, tk), lambda i, j: (i, 0)),
                    pl.BlockSpec((tk, tn), lambda i, j: (0, j)),
                    pl.BlockSpec((1, tn), lambda i, j: (0, j)),
                ],
                out_specs=pl.BlockSpec((tm, tn), lambda i, j: (i, j)),
            ),
            compiler_params=pltpu.CompilerParams(
                dimension_semantics=("parallel", "parallel"),
                vmem_limit_bytes=vmem_limit,
            ),
        )(x, wt_p, b_p)
    else:
        # K-reduction path with f32 VMEM accumulator, K innermost ("arbitrary").
        # NOTE: if profiling shows the weight DMA exposed at small tm, sweep
        # pipeline_mode=pl.Buffered(3) on the weight BlockSpec.
        out_p = pl.pallas_call(
            _linear_kernel_multi_k,
            out_shape=jax.ShapeDtypeStruct((Mp, Np), out_dtype),
            grid_spec=pltpu.PrefetchScalarGridSpec(
                num_scalar_prefetch=0,
                grid=(grid_m, grid_n, grid_k),
                in_specs=[
                    pl.BlockSpec((tm, tk), lambda i, j, k: (i, k)),
                    pl.BlockSpec((tk, tn), lambda i, j, k: (k, j)),
                    pl.BlockSpec((1, tn), lambda i, j, k: (0, j)),
                ],
                out_specs=pl.BlockSpec((tm, tn), lambda i, j, k: (i, j)),
                scratch_shapes=[pltpu.VMEM((tm, tn), jnp.float32)],
            ),
            compiler_params=pltpu.CompilerParams(
                dimension_semantics=("parallel", "parallel", "arbitrary"),
                vmem_limit_bytes=vmem_limit,
            ),
        )(x, wt_p, b_p)

    if Mp != B or Np != out_dim:
        out_p = out_p[:B, :out_dim]
    return out_p


# --------------------------------------------------------------------------
# Module wrapper: one-time parameter prep (transpose + pad hoisted out of jit)
# --------------------------------------------------------------------------

class PallasLinear:
    """Pallas equivalent of SimpleModel (a single nn.Linear)."""

    TM_CAP, TN_CAP, TK_CAP = 512, 512, 1024

    def __init__(self, weight, bias, compute_dtype=None):
        # weight: [D_out, D_in] (PyTorch layout), bias: [D_out]
        d_out, d_in = weight.shape
        self.d_out, self.d_in = d_out, d_in
        self.vmem_limit = _vmem_limit_bytes()

        cdtype = jnp.dtype(compute_dtype) if compute_dtype is not None else jnp.asarray(weight).dtype
        Kp = _round_up(d_in, 128)
        Np = _round_up(d_out, 128)
        self.Kp, self.Np = Kp, Np

        # One-time weight prep: transpose to [D_in, D_out], cast, lane-align pad.
        wt = jnp.asarray(weight).T.astype(cdtype)
        if Kp != d_in or Np != d_out:
            wt = jnp.pad(wt, ((0, Kp - d_in), (0, Np - d_out)))
        self.wt_p = wt

        # Bias stays f32 for the epilogue (accumulation is always f32).
        b = jnp.asarray(bias, dtype=jnp.float32).reshape(1, d_out)
        if Np != d_out:
            b = jnp.pad(b, ((0, 0), (0, Np - d_out)))
        self.b_p = b

        self.tk = _pick_tile(Kp, self.TK_CAP, 128)
        self.tn = _pick_tile(Np, self.TN_CAP, 128)

    def __call__(self, x):
        B = x.shape[0]
        tm = min(_round_up(B, 8), self.TM_CAP)
        Mp = _round_up(B, tm)
        tn = self.tn
        # v7x dual-TensorCore: make sure the parallel axes expose >= 2 blocks.
        if Mp // tm == 1 and self.Np // tn == 1 and self.Np >= 256:
            half = self.Np // 2
            tn = half if half % 128 == 0 else 128
        return _linear_forward(
            x, self.wt_p, self.b_p,
            out_dim=self.d_out, tm=tm, tn=tn, tk=self.tk,
            vmem_limit=self.vmem_limit,
        )


if __name__ == "__main__":
    # Small shapes consistent with the module: batch=8, input_dim=32, output_dim=16.
    batch, input_dim, output_dim = 8, 32, 16

    key = jax.random.PRNGKey(0)
    kx, kw, kb = jax.random.split(key, 3)

    x = jax.random.normal(kx, (batch, input_dim), dtype=jnp.float32)
    # Deterministic init mimicking nn.Linear default (uniform in +-1/sqrt(fan_in)).
    bound = 1.0 / (input_dim ** 0.5)
    weight = jax.random.uniform(
        kw, (output_dim, input_dim), minval=-bound, maxval=bound, dtype=jnp.float32
    )
    bias = jax.random.uniform(
        kb, (output_dim,), minval=-bound, maxval=bound, dtype=jnp.float32
    )

    model = PallasLinear(weight, bias)          # one-time weight transpose + pad
    y = model(x)
    jax.block_until_ready(y)

    # Pure-JAX reference check.
    y_ref = x @ weight.T + bias
    assert y.shape == (batch, output_dim)
    assert jnp.allclose(y, y_ref, atol=1e-5, rtol=1e-5)

    print("KERNEL_OK")
</pallas_src>

<mosaic_0001>
module attributes {stable_mosaic.version = 11 : i64} {
  func.func @_linear_kernel_single_k(%arg0: i32, %arg1: i32, %arg2: memref<8x128xf32, #tpu.memory_space<vmem>>, %arg3: memref<128x128xf32, #tpu.memory_space<vmem>>, %arg4: memref<1x128xf32, #tpu.memory_space<vmem>>, %arg5: memref<8x128xf32, #tpu.memory_space<vmem>>) attributes {dimension_semantics = [#tpu.dimension_semantics<parallel>, #tpu.dimension_semantics<parallel>], iteration_bounds = array<i64: 1, 1>, scalar_prefetch = 0 : i64, scratch_operands = 0 : i64, tpu.core_type = #tpu.core_type<tc>, window_params = [{transform_indices = @transform_0, window_bounds = array<i64: 8, 128>}, {transform_indices = @transform_1, window_bounds = array<i64: 128, 128>}, {transform_indices = @transform_2, window_bounds = array<i64: 1, 128>}, {transform_indices = @transform_3, window_bounds = array<i64: 8, 128>}]} {
    %c0 = arith.constant 0 : index
    %c0_0 = arith.constant 0 : index
    %0 = vector.load %arg2[%c0, %c0_0] : memref<8x128xf32, #tpu.memory_space<vmem>>, vector<8x128xf32>
    %c0_1 = arith.constant 0 : index
    %c0_2 = arith.constant 0 : index
    %1 = vector.load %arg3[%c0_1, %c0_2] : memref<128x128xf32, #tpu.memory_space<vmem>>, vector<128x128xf32>
    %cst = arith.constant dense<0.000000e+00> : vector<8x128xf32>
    %2 = tpu.matmul %0, %1, %cst {dimension_numbers = #tpu.dot_dimension_numbers<[1], [0], [0], [1], [0, 0, 1, 1], [], []>} : vector<8x128xf32>, vector<128x128xf32>, vector<8x128xf32> -> vector<8x128xf32>
    %c0_3 = arith.constant 0 : index
    %c0_4 = arith.constant 0 : index
    %3 = vector.load %arg4[%c0_3, %c0_4] : memref<1x128xf32, #tpu.memory_space<vmem>>, vector<1x128xf32>
    %4 = vector.broadcast %3 : vector<1x128xf32> to vector<8x128xf32>
    %5 = arith.addf %2, %4 : vector<8x128xf32>
    %c0_5 = arith.constant 0 : index
    %c0_6 = arith.constant 0 : index
    %6 = vector.load %arg5[%c0_5, %c0_6] : memref<8x128xf32, #tpu.memory_space<vmem>>, vector<8x128xf32>
    tpu.vector_store %arg5[%c0_5, %c0_6], %5 {strides = array<i32>} : memref<8x128xf32, #tpu.memory_space<vmem>>, vector<8x128xf32>,
    return
  }
  func.func @transform_0(%arg0: i32, %arg1: i32) -> (i32, i32) {
    %c0_i32 = arith.constant 0 : i32
    %c0_i32_0 = arith.constant 0 : i32
    return %arg0, %c0_i32 : i32, i32
  }
  func.func @transform_1(%arg0: i32, %arg1: i32) -> (i32, i32) {
    %c0_i32 = arith.constant 0 : i32
    %c0_i32_0 = arith.constant 0 : i32
    return %c0_i32, %arg1 : i32, i32
  }
  func.func @transform_2(%arg0: i32, %arg1: i32) -> (i32, i32) {
    %c0_i32 = arith.constant 0 : i32
    %c0_i32_0 = arith.constant 0 : i32
    return %c0_i32, %arg1 : i32, i32
  }
  func.func @transform_3(%arg0: i32, %arg1: i32) -> (i32, i32) {
    %c0_i32 = arith.constant 0 : i32
    return %arg0, %arg1 : i32, i32
  }
}

</mosaic_0001>

<bundles_post_ra>
// kernel: _linear_forward.1
= control target key start
LH: loop header
LB: loop body
LE: loop exit
PB: predicated region body
PF: predicated region fallthrough
CT: control target
= control target key end

     0   :  { %8 = vsyncpa [#allocation3], 0  ;;  %s328_s0 = inlined_call_operand.vmem [shape: f32[8,128], index: 0, kind: input, shape index: {}]   ;;  %s329_s1 = inlined_call_operand.hbm [shape: f32[128,128], index: 1, kind: input, shape index: {}]   ;;  %s330_s2 = inlined_call_operand.vmem [shape: f32[1,128], index: 2, kind: input, shape index: {}]   ;;  %s331_s3 = inlined_call_operand.hbm [shape: f32[8,128], index: 3, kind: output, shape index: {}]  }
   0x1   :  { %9 = vsyncpa [#allocation4], 0  ;;  %s271_s12 = smov [#allocation2]   ;;  %s223_s16 = scalar_lea.hbm %s329_s1, 2048 }
   0x2   :  { %s17_s13 = sshll.u32 %s271_s12, 4  ;;  %p224_p0 = scmp.ne.s32.totalorder %s329_s1, %s223_s16  ;;  %s18_s13 = int_to_ptr.vmem [resolvable:$true] %s17_s13 }
   0x3   :  { %p227_p1 = scmp.lt.u32.totalorder %s223_s16, %s329_s1 }
   0x5   :  { %p229_p2 = pnand %p227_p1, %p224_p0 }
   0x7   :  { %232 = shalt.err (!%p229_p2)
}
   0x8   :  { %s233_s21 = scalar_lea.vmem %s18_s13, 2048  ;;  %p238_p4 = scmp.lt.s32.totalorder %s18_s13, %s18_s13 }
   0x9   :  { %p234_p3 = scmp.ne.s32.totalorder %s18_s13, %s233_s21  ;;  %p239_p5 = scmp.lt.s32.totalorder %s233_s21, %s233_s21 }
   0xb   :  { %p240_p6 = por %p239_p5, %p238_p4 }
   0xd   :  { %p241_p7 = pnand %p240_p6, %p234_p3 }
   0xf   :  { %244 = shalt.err (!%p241_p7)
}
  0x10   :  { %s272_s22 = smov 128   ;;  %s273_s23 = smov 8  }
  0x11   :  { %23 = dma.hbm_to_vmem [thread:$0]  %s329_s1, 2048, %s18_s13, [#allocation3], %s272_s22, %s272_s22, %s273_s23  }
  0x12   :  { %267 = dma.done.wait [#allocation3], 2048  }
  0x13   :  { %268 = vsyncadd [#allocation3], 4294965248  ;;  %v274_v0 = vmov 0.0|0.0   ;;  %vm275_vm0 = vmmov 0   ;;  %v276_v1 = vmov 0.0   ;;  %v30_v2 = vld [vmem:[#allocation2] sm:$0xff] }
  0x14   :  { %192 = vmatprep.subr.bf16.mxu0 %v274_v0  ;;  %189 = vmatprep.mubr.msk.f32.mxu0 %vm275_vm0, %v276_v1  ;;  %v31_v3 = vld [vmem:[#allocation2 + $0x8] sm:$0xff]  ;;  %v32_v4 = vld [vmem:[#allocation2 + $0x10] sm:$0xff]  ;;  %v33_v6 = vld [vmem:[#allocation2 + $0x18] sm:$0xff]  ;;  %s277_s29 = smov [#allocation5]  }
  0x15   :  { %v193_v5 = vpack.c.bf16 %v31_v3, %v30_v2  ;;  %v196_v7 = vpack.c.bf16 %v33_v6, %v32_v4  ;;  %v34_v8 = vld [vmem:[#allocation2 + $0x20] sm:$0xff]  ;;  %v35_v9 = vld [vmem:[#allocation2 + $0x28] sm:$0xff]  ;;  %v36_v11 = vld [vmem:[#allocation2 + $0x30] sm:$0xff]  ;;  %s130_s30 = sshll.u32 %s277_s29, 4  ;;  %s131_s30 = int_to_ptr.vmem [resolvable:$true] %s130_s30 }
  0x16   :  { %v199_v10 = vpack.c.bf16 %v35_v9, %v34_v8  ;;  %v37_v12 = vld [vmem:[#allocation2 + $0x38] sm:$0xff]  ;;  %v38_v14 = vld [vmem:[#allocation2 + $0x40] sm:$0xff]  ;;  %v39_v15 = vld [vmem:[#allocation2 + $0x48] sm:$0xff]  ;;  %s245_s4 = scalar_lea.vmem %s131_s30, 128  ;;  %p250_p9 = scmp.lt.s32.totalorder %s131_s30, %s131_s30 }
  0x17   :  { %194 = vmatpush3.bf16.msra.mxu0 %v193_v5  ;;  %v202_v13 = vpack.c.bf16 %v37_v12, %v36_v11  ;;  %v205_v16 = vpack.c.bf16 %v39_v15, %v38_v14  ;;  %v40_v17 = vld [vmem:[#allocation2 + $0x50] sm:$0xff]  ;;  %v41_v18 = vld [vmem:[#allocation2 + $0x58] sm:$0xff]  ;;  %v42_v20 = vld [vmem:[#allocation2 + $0x60] sm:$0xff]  ;;  %p246_p8 = scmp.ne.s32.totalorder %s131_s30, %s245_s4  ;;  %p251_p10 = scmp.lt.s32.totalorder %s245_s4, %s245_s4 }
  0x18   :  { %195 = vmatprep.subr.bf16.mxu0 %v274_v0  ;;  %v208_v19 = vpack.c.bf16 %v41_v18, %v40_v17  ;;  %v43_v21 = vld [vmem:[#allocation2 + $0x68] sm:$0xff]  ;;  %v44_v23 = vld [vmem:[#allocation2 + $0x70] sm:$0xff]  ;;  %v45_v24 = vld [vmem:[#allocation2 + $0x78] sm:$0xff] }
  0x19   :  { %v211_v22 = vpack.c.bf16 %v43_v21, %v42_v20  ;;  %v214_v25 = vpack.c.bf16 %v45_v24, %v44_v23  ;;  %v29_v26 = vld [vmem:[%s328_s0] sm:$0xff]  ;;  %p252_p11 = por %p251_p10, %p250_p9 }
  0x1a   :  { %v139_v27 = vld [vmem:[%s330_s2] ss:$0 sm:$0xff] }
  0x1b   :  { %197 = vmatpush3.bf16.msra.mxu0 %v196_v7  ;;  %p253_p12 = pnand %p252_p11, %p246_p8 }
  0x1c   :  { %198 = vmatprep.subr.bf16.mxu0 %v274_v0 }
  0x1f   :  { %200 = vmatpush3.bf16.msra.mxu0 %v199_v10 }
  0x20   :  { %201 = vmatprep.subr.bf16.mxu0 %v274_v0 }
  0x23   :  { %203 = vmatpush3.bf16.msra.mxu0 %v202_v13 }
  0x24   :  { %204 = vmatprep.subr.bf16.mxu0 %v274_v0 }
  0x27   :  { %206 = vmatpush3.bf16.msra.mxu0 %v205_v16 }
  0x28   :  { %207 = vmatprep.subr.bf16.mxu0 %v274_v0 }
  0x2b   :  { %209 = vmatpush3.bf16.msra.mxu0 %v208_v19 }
  0x2c   :  { %210 = vmatprep.subr.bf16.mxu0 %v274_v0 }
  0x2f   :  { %212 = vmatpush3.bf16.msra.mxu0 %v211_v22 }
  0x30   :  { %213 = vmatprep.subr.bf16.mxu0 %v274_v0 }
  0x33   :  { %215 = vmatpush3.bf16.msra.mxu0 %v214_v25 }
  0x36   :  { %190 = vmatmul.mubr.f32.vlgmr.msra.gmra.mrb[0].mxu0 %v29_v26 }
 0x109   :  { %v119_v28 = vpop.f32.mrb[0].mxu0 }
 0x10a   :  { %v120_v29 = vadd.f32 %v139_v27, %v119_v28  ;;  %v191_v30 = vpop.f32.mrb[1].mxu0 }
 0x10c   :  { %123 = vst [vmem:[#allocation5] sm:$0xff] %v120_v29 }
 0x10d   :  { %256 = shalt.err (!%p253_p12)
}
 0x10e   :  { %s257_s6 = scalar_lea.hbm %s331_s3, 128 }
 0x10f   :  { %p258_p13 = scmp.ne.s32.totalorder %s331_s3, %s257_s6  ;;  %p261_p0 = scmp.lt.u32.totalorder %s257_s6, %s331_s3 }
 0x111   :  { %p263_p1 = pnand %p261_p0, %p258_p13 }
 0x113   :  { %266 = shalt.err (!%p263_p1)
}
 0x114   :  { %133 = dma.vmem_to_hbm [thread:$0]  %s131_s30, 128, %s331_s3, [#allocation4]  }
 0x115   :  { %269 = dma.done.wait [#allocation4], 128  }
 0x116   :  { %270 = vsyncadd [#allocation4], 4294967168 }
 0x117   :  { %137 = vsyncpa [#allocation3], 1 }
 0x118   :  { %138 = vsyncpa [#allocation4], 1 }

</bundles_post_ra>
